<compile_context>
chip_gen: v7x
topology: tpu7x:2x2x1
jax: 0.10.0
libtpu: 0.0.40
codegen_flags: <defaults>
</compile_context>

<pallas_src>
import math

import jax
import jax.numpy as jnp
from jax.experimental import pallas as pl
from jax.experimental.pallas import tpu as pltpu

BLOCK_SIZE = 16   # max sequence length (causal mask size in the PyTorch module)
DROPOUT_P = 0.1   # eval-mode identity in this kernel (see TODO above)


def _head_kernel(x_ref, wk_ref, wq_ref, wv_ref, o_ref):
    """Single grid step, whole batch resident in VMEM.

    x_ref: (B, T, C); wk/wq/wv_ref: (C, H) with the C**-0.5 scale already
    folded into wq; o_ref: (B, T, H).
    """
    B, T, C = x_ref.shape
    H = o_ref.shape[-1]

    x2 = x_ref[...].reshape(B * T, C)

    # --- Projections: three separate MXU matmuls (no fused-qkv lane slicing). ---
    k = jnp.dot(x2, wk_ref[...], preferred_element_type=jnp.float32).reshape(B, T, H)
    q = jnp.dot(x2, wq_ref[...], preferred_element_type=jnp.float32).reshape(B, T, H)
    v = jnp.dot(x2, wv_ref[...], preferred_element_type=jnp.float32).reshape(B, T, H)

    # --- Attention scores: contract the last dim of q and k (no explicit k.T). ---
    # Scale (C**-0.5) is already folded into wq at weight-prep time.
    wei = jnp.einsum('bqh,bkh->bqk', q, k,
                     preferred_element_type=jnp.float32)                   # (B, T, T)

    # --- Causal mask (tril): keep row >= col. Use dtype-min (finite) so a
    #     fully masked row cannot produce NaN through exp(-inf - (-inf)). ---
    row = jax.lax.broadcasted_iota(jnp.int32, (T, T), 0)
    col = jax.lax.broadcasted_iota(jnp.int32, (T, T), 1)
    wei = jnp.where(row >= col, wei, jnp.finfo(wei.dtype).min)             # broadcasts over B

    # --- Numerically stable softmax along the key axis (all in f32). ---
    m = jnp.max(wei, axis=-1, keepdims=True)
    e = jnp.exp(wei - m)
    s = jnp.sum(e, axis=-1, keepdims=True)
    p = e * pl.reciprocal(s, approx=False)   # exact: EUP slot is idle, parity is free

    # Dropout: eval-mode identity (see TODO at top).

    # --- Output: wei @ v (batched). ---
    out = jnp.einsum('bqk,bkh->bqh', p.astype(v.dtype), v,
                     preferred_element_type=jnp.float32)                   # (B, T, H)
    o_ref[...] = out.astype(o_ref.dtype)


def prepare_head_weights(w_key, w_query, w_value, embd_size):
    """One-time weight prep (outside the jitted forward): fold the module's
    C**-0.5 score scale into W_query so the kernel never multiplies the
    (B, T, T) score tensor by a scalar."""
    scale = embd_size ** -0.5
    return w_key, w_query * scale, w_value


@jax.jit
def head_forward(x, w_key, w_query_scaled, w_value):
    """x: (B, T, C); weights: (C, H), w_query_scaled pre-multiplied by C**-0.5.
    Returns (B, T, H)."""
    B, T, C = x.shape
    H = w_key.shape[1]

    itemsize = jnp.dtype(x.dtype).itemsize
    flops = (
        3 * 2 * B * T * C * H      # three projections
        + 2 * B * T * T * H        # q @ k^T
        + 2 * B * T * T * H        # wei @ v
    )
    bytes_accessed = (x.size + 3 * C * H + B * T * H) * itemsize
    cost = pl.CostEstimate(flops=flops, transcendentals=B * T * T,
                           bytes_accessed=bytes_accessed)

    # No grid: the whole problem (~20 KB) fits in VMEM in one step. At this
    # size the call is fixed-overhead bound on every TPU generation, so grid
    # pipelining / megacore sharding would only add per-step overhead.
    return pl.pallas_call(
        _head_kernel,
        out_shape=jax.ShapeDtypeStruct((B, T, H), x.dtype),
        in_specs=[
            pl.BlockSpec(memory_space=pltpu.MemorySpace.VMEM),   # x
            pl.BlockSpec(memory_space=pltpu.MemorySpace.VMEM),   # W_key
            pl.BlockSpec(memory_space=pltpu.MemorySpace.VMEM),   # W_query (pre-scaled)
            pl.BlockSpec(memory_space=pltpu.MemorySpace.VMEM),   # W_value
        ],
        out_specs=pl.BlockSpec(memory_space=pltpu.MemorySpace.VMEM),
        cost_estimate=cost,
    )(x, w_key, w_query_scaled, w_value)


def reference_forward(x, w_key, w_query, w_value):
    """Pure-JAX reference mirroring the PyTorch module (eval mode), using the
    UNSCALED query weight like the original module."""
    B, T, C = x.shape
    k = x @ w_key
    q = x @ w_query
    v = x @ w_value
    wei = (q @ jnp.swapaxes(k, -2, -1)) * (C ** -0.5)
    tril = jnp.tril(jnp.ones((BLOCK_SIZE, BLOCK_SIZE)))[:T, :T]
    wei = jnp.where(tril == 0, -jnp.inf, wei)
    wei = jax.nn.softmax(wei, axis=-1)
    return wei @ v


if __name__ == "__main__":
    # Small shapes consistent with the module: batch=2, T=block_size=16,
    # embd_size=32, head_size=16.
    B, T, C, Hd = 2, BLOCK_SIZE, 32, 16

    key = jax.random.PRNGKey(0)
    kx, kk, kq, kv = jax.random.split(key, 4)

    x = jax.random.normal(kx, (B, T, C), dtype=jnp.float32)
    # Deterministic init mimicking nn.Linear(embd_size, head_size, bias=False):
    # PyTorch stores weight as (H, C); we store the transpose (C, H).
    bound = 1.0 / math.sqrt(C)
    w_key_p = jax.random.uniform(kk, (C, Hd), minval=-bound, maxval=bound, dtype=jnp.float32)
    w_query_p = jax.random.uniform(kq, (C, Hd), minval=-bound, maxval=bound, dtype=jnp.float32)
    w_value_p = jax.random.uniform(kv, (C, Hd), minval=-bound, maxval=bound, dtype=jnp.float32)

    # One-time weight prep (outside the jitted forward).
    wk, wq_scaled, wv = prepare_head_weights(w_key_p, w_query_p, w_value_p, C)

    out = head_forward(x, wk, wq_scaled, wv)
    out = jax.block_until_ready(out)

    ref = reference_forward(x, w_key_p, w_query_p, w_value_p)
    assert out.shape == (B, T, Hd), out.shape
    max_err = float(jnp.max(jnp.abs(out - ref)))
    # Exact reciprocal restores near-exact f32 parity (only reassociation noise
    # from folding the scale into W_query remains).
    assert jnp.allclose(out, ref, atol=1e-4, rtol=1e-4), max_err

    print("KERNEL_OK")
</pallas_src>

<mosaic_0001>
module attributes {stable_mosaic.version = 11 : i64} {
  func.func @_head_kernel(%arg0: memref<2x16x32xf32, #tpu.memory_space<vmem>>, %arg1: memref<32x16xf32, #tpu.memory_space<vmem>>, %arg2: memref<32x16xf32, #tpu.memory_space<vmem>>, %arg3: memref<32x16xf32, #tpu.memory_space<vmem>>, %arg4: memref<2x16x16xf32, #tpu.memory_space<vmem>>) attributes {dimension_semantics = [], scalar_prefetch = 0 : i64, scratch_operands = 0 : i64, tpu.core_type = #tpu.core_type<tc>} {
    %c0 = arith.constant 0 : index
    %c0_0 = arith.constant 0 : index
    %c0_1 = arith.constant 0 : index
    %0 = vector.load %arg0[%c0, %c0_0, %c0_1] : memref<2x16x32xf32, #tpu.memory_space<vmem>>, vector<2x16x32xf32>
    %1 = vector.shape_cast %0 : vector<2x16x32xf32> to vector<32x32xf32>
    %c0_2 = arith.constant 0 : index
    %c0_3 = arith.constant 0 : index
    %2 = vector.load %arg1[%c0_2, %c0_3] : memref<32x16xf32, #tpu.memory_space<vmem>>, vector<32x16xf32>
    %cst = arith.constant dense<0.000000e+00> : vector<32x16xf32>
    %3 = tpu.matmul %1, %2, %cst {dimension_numbers = #tpu.dot_dimension_numbers<[1], [0], [0], [1], [0, 0, 1, 1], [], []>} : vector<32x32xf32>, vector<32x16xf32>, vector<32x16xf32> -> vector<32x16xf32>
    %4 = vector.shape_cast %3 : vector<32x16xf32> to vector<2x16x16xf32>
    %c0_4 = arith.constant 0 : index
    %c0_5 = arith.constant 0 : index
    %5 = vector.load %arg2[%c0_4, %c0_5] : memref<32x16xf32, #tpu.memory_space<vmem>>, vector<32x16xf32>
    %cst_6 = arith.constant dense<0.000000e+00> : vector<32x16xf32>
    %6 = tpu.matmul %1, %5, %cst_6 {dimension_numbers = #tpu.dot_dimension_numbers<[1], [0], [0], [1], [0, 0, 1, 1], [], []>} : vector<32x32xf32>, vector<32x16xf32>, vector<32x16xf32> -> vector<32x16xf32>
    %7 = vector.shape_cast %6 : vector<32x16xf32> to vector<2x16x16xf32>
    %c0_7 = arith.constant 0 : index
    %c0_8 = arith.constant 0 : index
    %8 = vector.load %arg3[%c0_7, %c0_8] : memref<32x16xf32, #tpu.memory_space<vmem>>, vector<32x16xf32>
    %cst_9 = arith.constant dense<0.000000e+00> : vector<32x16xf32>
    %9 = tpu.matmul %1, %8, %cst_9 {dimension_numbers = #tpu.dot_dimension_numbers<[1], [0], [0], [1], [0, 0, 1, 1], [], []>} : vector<32x32xf32>, vector<32x16xf32>, vector<32x16xf32> -> vector<32x16xf32>
    %10 = vector.shape_cast %9 : vector<32x16xf32> to vector<2x16x16xf32>
    "tpu.trace_start"() <{level = 10 : i32, message = "bqh,bkh->bqk"}> : () -> ()
    %cst_10 = arith.constant dense<0.000000e+00> : vector<2x16x16xf32>
    %11 = tpu.matmul %7, %4, %cst_10 {dimension_numbers = #tpu.dot_dimension_numbers<[2], [2], [1], [1], [0, 0, 0, 1, 1, 1], [0], [0]>} : vector<2x16x16xf32>, vector<2x16x16xf32>, vector<2x16x16xf32> -> vector<2x16x16xf32>
    "tpu.trace_stop"() : () -> ()
    %12 = tpu.iota {dimensions = array<i32: 0>} : vector<16x16xi32>
    %13 = tpu.iota {dimensions = array<i32: 1>} : vector<16x16xi32>
    %14 = arith.cmpi sge, %12, %13 : vector<16x16xi32>
    %cst_11 = arith.constant -3.40282347E+38 : f32
    %15 = vector.shape_cast %14 : vector<16x16xi1> to vector<1x16x16xi1>
    %16 = vector.broadcast %15 : vector<1x16x16xi1> to vector<2x16x16xi1>
    %17 = vector.broadcast %cst_11 : f32 to vector<2x16x16xf32>
    %18 = arith.select %16, %11, %17 : vector<2x16x16xi1>, vector<2x16x16xf32>
    %cst_12 = arith.constant dense<0xFF800000> : vector<2x16xf32>
    %19 = vector.multi_reduction <maximumf>, %18, %cst_12 [2] : vector<2x16x16xf32> to vector<2x16xf32>
    %20 = vector.shape_cast %19 : vector<2x16xf32> to vector<2x16x1xf32>
    %21 = vector.broadcast %20 : vector<2x16x1xf32> to vector<2x16x16xf32>
    %22 = arith.subf %18, %21 : vector<2x16x16xf32>
    %23 = math.exp %22 : vector<2x16x16xf32>
    %cst_13 = arith.constant dense<0.000000e+00> : vector<2x16xf32>
    %24 = vector.multi_reduction <add>, %23, %cst_13 [2] : vector<2x16x16xf32> to vector<2x16xf32>
    %25 = vector.shape_cast %24 : vector<2x16xf32> to vector<2x16x1xf32>
    %26 = tpu.reciprocal %25 : vector<2x16x1xf32> -> vector<2x16x1xf32>
    %27 = vector.broadcast %26 : vector<2x16x1xf32> to vector<2x16x16xf32>
    %28 = arith.mulf %23, %27 : vector<2x16x16xf32>
    "tpu.trace_start"() <{level = 10 : i32, message = "bqk,bkh->bqh"}> : () -> ()
    %cst_14 = arith.constant dense<0.000000e+00> : vector<2x16x16xf32>
    %29 = tpu.matmul %28, %10, %cst_14 {dimension_numbers = #tpu.dot_dimension_numbers<[2], [1], [1], [2], [0, 0, 0, 1, 1, 2], [0], [0]>} : vector<2x16x16xf32>, vector<2x16x16xf32>, vector<2x16x16xf32> -> vector<2x16x16xf32>
    "tpu.trace_stop"() : () -> ()
    %c0_15 = arith.constant 0 : index
    %c0_16 = arith.constant 0 : index
    %c0_17 = arith.constant 0 : index
    %30 = vector.load %arg4[%c0_15, %c0_16, %c0_17] : memref<2x16x16xf32, #tpu.memory_space<vmem>>, vector<2x16x16xf32>
    tpu.vector_store %arg4[%c0_15, %c0_16, %c0_17], %29 {strides = array<i32>} : memref<2x16x16xf32, #tpu.memory_space<vmem>>, vector<2x16x16xf32>,
    return
  }
}

</mosaic_0001>

<bundles_post_ra>
// kernel: head_forward.1
= control target key start
LH: loop header
LB: loop body
LE: loop exit
PB: predicated region body
PF: predicated region fallthrough
CT: control target
= control target key end

     0   :  { %vm26_vm0 = vcmask 261120   ;;  %s1065_s0 = inlined_call_operand.vmem [shape: f32[2,16,32], index: 0, kind: input, shape index: {}]   ;;  %s1066_s1 = inlined_call_operand.vmem [shape: f32[32,16], index: 1, kind: input, shape index: {}]   ;;  %s1067_s2 = inlined_call_operand.vmem [shape: f32[32,16], index: 2, kind: input, shape index: {}]   ;;  %s1068_s3 = inlined_call_operand.vmem [shape: f32[32,16], index: 3, kind: input, shape index: {}]   ;;  %s1069_s4 = inlined_call_operand.hbm [shape: f32[2,16,16], index: 4, kind: output, shape index: {}]  }
   0x1   :  { %v22_v0 = vld [vmem:[%s1066_s1] sm:$0xff]  ;;  %v23_v1 = vld [vmem:[%s1066_s1 + $0x8] sm:$0xff]  ;;  %v24_v2 = vld [vmem:[%s1066_s1 + $0x10] sm:$0xff] }
   0x2   :  { %v852_v3 = vpack.c.bf16 %v23_v1, %v22_v0  ;;  %v25_v4 = vld [vmem:[%s1066_s1 + $0x18] sm:$0xff]  ;;  %v18_v5 = vld [vmem:[%s1065_s0] sm:$0xff]  ;;  %v125_v8 = vld [vmem:[%s1067_s2 + $0x8] sm:$0xff] }
   0x3   :  { %v856_v6 = vpack.c.bf16 %v25_v4, %v24_v2  ;;  %790 = vmatprep.mubr.msk.f32.mxu0 %vm26_vm0, %v18_v5  ;;  %v124_v7 = vld [vmem:[%s1067_s2] sm:$0xff]  ;;  %804 = vmatprep.mubr.msk.f32.mxu1 %vm26_vm0, %v18_v5  ;;  %v126_v10 = vld [vmem:[%s1067_s2 + $0x10] sm:$0xff]  ;;  %v127_v11 = vld [vmem:[%s1067_s2 + $0x18] sm:$0xff] }
   0x4   :  { %853 = vmatprep.subr.bf16.mxu0 %v852_v3  ;;  %v860_v9 = vpack.c.bf16 %v125_v8, %v124_v7  ;;  %v864_v12 = vpack.c.bf16 %v127_v11, %v126_v10  ;;  %v213_v13 = vld [vmem:[%s1068_s3] sm:$0xff]  ;;  %v214_v14 = vld [vmem:[%s1068_s3 + $0x8] sm:$0xff] }
   0x5   :  { %855 = vmatpush3.bf16.msra.mxu0 %v852_v3  ;;  %v868_v15 = vpack.c.bf16 %v214_v14, %v213_v13 }
   0x6   :  { %857 = vmatprep.subr.bf16.mxu0 %v856_v6  ;;  %861 = vmatprep.subr.bf16.mxu1 %v860_v9 }
   0x7   :  { %9 = vsyncpa [#allocation3], 0  ;;  %863 = vmatpush3.bf16.msra.mxu1 %v860_v9  ;;  %v215_v16 = vld [vmem:[%s1068_s3 + $0x10] sm:$0xff]  ;;  %v216_v17 = vld [vmem:[%s1068_s3 + $0x18] sm:$0xff]  ;;  %vm302_vm1 = vcmask 130048   ;;  %v477_v38 = vlaneseq }
   0x8   :  { %865 = vmatprep.subr.bf16.mxu1 %v864_v12  ;;  %v19_v18 = vld [vmem:[%s1065_s0 + $0x8] sm:$0xff]  ;;  %v20_v19 = vld [vmem:[%s1065_s0 + $0x10] sm:$0xff]  ;;  %v872_v20 = vpack.c.bf16 %v216_v17, %v215_v16  ;;  %v21_v21 = vld [vmem:[%s1065_s0 + $0x18] sm:$0xff]  ;;  %s939_s0 = smov [#allocation2]  }
   0x9   :  { %859 = vmatpush3.bf16.msra.mxu0 %v856_v6  ;;  %vm877_vm2 = vmpackc.low %vm302_vm1, %vm302_vm1  ;;  %v478_v39 = vshrl.u32 %v477_v38, 7  ;;  %v481_v40 = vand.u32 127, %v477_v38  ;;  %s707_s3 = sshll.u32 %s939_s0, 4  ;;  %s708_s3 = int_to_ptr.vmem [resolvable:$true] %s707_s3 }
   0xa   :  { %869 = vmatprep.subr.bf16.mxu0 %v868_v15  ;;  %s915_s19 = scalar_lea.vmem %s708_s3, 512  ;;  %p920_p1 = scmp.lt.s32.totalorder %s708_s3, %s708_s3 }
   0xb   :  { %867 = vmatpush3.bf16.msra.mxu1 %v864_v12  ;;  %v479_v41 = vadd.s32 8, %v478_v39  ;;  %vm482_vm3 = vcmp.ge.s32.totalorder %v478_v39, %v481_v40  ;;  %p916_p0 = scmp.ne.s32.totalorder %s708_s3, %s915_s19  ;;  %p921_p2 = scmp.lt.s32.totalorder %s915_s19, %s915_s19 }
   0xc   :  { %791 = vmatmul.mubr.msk.f32.vlgmr.msra.gmra.mrb[0].mxu0 %vm26_vm0, %v19_v18 }
   0xd   :  { %793 = vmatprep.mubr.msk.f32.mxu0 %vm26_vm0, %v20_v19  ;;  %871 = vmatpush3.bf16.msra.mxu0 %v868_v15  ;;  %vm483_vm4 = vcmp.ge.s32.totalorder %v479_v41, %v481_v40  ;;  %p922_p3 = por %p921_p2, %p920_p1 }
   0xe   :  { %805 = vmatmul.mubr.msk.f32.vlgmr.msra.gmra.mrb[0].mxu1 %vm26_vm0, %v19_v18  ;;  %873 = vmatprep.subr.bf16.mxu0 %v872_v20 }
   0xf   :  { %807 = vmatprep.mubr.msk.f32.mxu1 %vm26_vm0, %v20_v19  ;;  %p923_p4 = pnand %p922_p3, %p916_p0 }
  0x10   :  { %794 = vmatmul.mubr.msk.f32.gmra.mrb[2].mxu0 %vm26_vm0, %v21_v21 }
  0x11   :  { %875 = vmatpush3.bf16.msra.mxu0 %v872_v20  ;;  %818 = vmatprep.mubr.msk.f32.mxu0 %vm26_vm0, %v18_v5 }
  0x12   :  { %808 = vmatmul.mubr.msk.f32.gmra.mrb[2].mxu1 %vm26_vm0, %v21_v21 }
  0x14   :  { %819 = vmatmul.mubr.msk.f32.vlgmr.msra.gmra.mrb[4].mxu0 %vm26_vm0, %v19_v18 }
  0x15   :  { %821 = vmatprep.mubr.msk.f32.mxu0 %vm26_vm0, %v20_v19 }
  0x18   :  { %822 = vmatmul.mubr.msk.f32.gmra.mrb[6].mxu0 %vm26_vm0, %v21_v21 }
  0xdf   :  { %v792_v22 = vpop.f32.mrb[0].mxu0 }
  0xe0   :  { %v105_v23 = vpop.f32.mrb[1].mxu0 }
  0xe1   :  { %v876_v24 = vpack.c.bf16 %v792_v22, %v105_v23  ;;  %v806_v25 = vpop.f32.mrb[0].mxu1 }
  0xe2   :  { %v194_v26 = vpop.f32.mrb[1].mxu1 }
  0xe3   :  { %v795_v27 = vpop.f32.mrb[2].mxu0  ;;  %878 = vmatprep.subr.msk.bf16.mxu1 %vm877_vm2, %v876_v24  ;;  %828 = vmatprep.mubr.msk.f32.mxu1 %vm302_vm1, %v194_v26 }
  0xe4   :  { %v115_v28 = vpop.f32.mrb[3].mxu0  ;;  %881 = vmatpush3.bf16.xpose.msk.msra.mxu1 %vm877_vm2, %v876_v24 }
  0xe5   :  { %v882_v29 = vpack.c.bf16 %v795_v27, %v115_v28  ;;  %v809_v30 = vpop.f32.mrb[2].mxu1 }
  0xe6   :  { %v204_v31 = vpop.f32.mrb[3].mxu1 }
  0xe7   :  { %884 = vmatprep.subr.msk.bf16.mxu0 %vm877_vm2, %v882_v29  ;;  %835 = vmatprep.mubr.msk.f32.mxu0 %vm302_vm1, %v204_v31  ;;  %v820_v32 = vpop.f32.mrb[4].mxu0 }
  0xe8   :  { %887 = vmatpush3.bf16.xpose.msk.msra.mxu0 %vm877_vm2, %v882_v29  ;;  %v283_v33 = vpop.f32.mrb[5].mxu0 }
  0xe9   :  { %v888_v34 = vpack.c.bf16 %v820_v32, %v283_v33 }
  0xeb   :  { %829 = vmatmul.mubr.msk.f32.vlgmr.msra.gmra.mrb[4].mxu1 %vm302_vm1, %v806_v25  ;;  %889 = vmatprep.subr.bf16.mxu1 %v888_v34  ;;  %v823_v35 = vpop.f32.mrb[6].mxu0 }
  0xec   :  { %891 = vmatpush3.bf16.msra.mxu1 %v888_v34  ;;  %v293_v36 = vpop.f32.mrb[7].mxu0 }
  0xed   :  { %v1033_v37 = vpack.c.bf16 %v823_v35, %v293_v36 }
  0xef   :  { %836 = vmatmul.mubr.msk.f32.vlgmr.msra.gmra.mrb[8].mxu0 %vm302_vm1, %v809_v30  ;;  %893 = vmatprep.subr.bf16.mxu1 %v1033_v37 }
 0x1be   :  { %v830_v42 = vpop.f32.mrb[4].mxu1 }
 0x1bf   :  { %v381_v43 = vpop.f32.mrb[5].mxu1  ;;  %v489_v46 = vsel %vm483_vm4, %v830_v42, -3.4028235e+38 }
 0x1c0   :  { %v488_v44 = vsel %vm482_vm3, %v381_v43, -3.4028235e+38  ;;  %v495_v50 = vsel %vm302_vm1, %v489_v46, -inf }
 0x1c1   :  { %v492_v45 = vsel %vm302_vm1, %v488_v44, -inf }
 0x1c2   :  { %493 = vmax.xlane.f32.xlu0 %v492_v45  ;;  %v837_v47 = vpop.f32.mrb[8].mxu0 }
 0x1c3   :  { %v468_v48 = vpop.f32.mrb[9].mxu0  ;;  %v491_v52 = vsel %vm483_vm4, %v837_v47, -3.4028235e+38 }
 0x1c4   :  { %v490_v49 = vsel %vm482_vm3, %v468_v48, -3.4028235e+38  ;;  %v501_v53 = vsel %vm302_vm1, %v491_v52, -inf }
 0x1c5   :  { %v498_v51 = vsel %vm302_vm1, %v490_v49, -inf }
 0x1c6   :  { %496 = vmax.xlane.f32.xlu0 %v495_v50  ;;  %499 = vmax.xlane.f32.xlu1 %v498_v51 }
 0x1ca   :  { %502 = vmax.xlane.f32.xlu1 %v501_v53 }
 0x24f   :  { %v494_v54 = vpop.xlane.xlu0 %493 }
 0x250   :  { %v504_v55 = vsub.f32 %v488_v44, %v494_v54 }
 0x252   :  { %v508_v56 = vmul.f32 1.442695, %v504_v55 }
 0x253   :  { %v497_v57 = vpop.xlane.xlu0 %496  ;;  %v500_v58 = vpop.xlane.xlu1 %499 }
 0x254   :  { %899 = vpow2.f32 %v508_v56  ;;  %v505_v59 = vsub.f32 %v489_v46, %v497_v57  ;;  %v506_v60 = vsub.f32 %v490_v49, %v500_v58 }
 0x256   :  { %v510_v61 = vmul.f32 1.442695, %v505_v59  ;;  %v512_v62 = vmul.f32 1.442695, %v506_v60 }
 0x257   :  { %v503_v63 = vpop.xlane.xlu1 %502 }
 0x258   :  { %901 = vpow2.f32 %v510_v61  ;;  %v507_v0 = vsub.f32 %v491_v52, %v503_v63 }
 0x259   :  { %903 = vpow2.f32 %v512_v62 }
 0x25a   :  { %v514_v1 = vmul.f32 1.442695, %v507_v0 }
 0x25c   :  { %905 = vpow2.f32 %v514_v1 }
 0x25e   :  { %v900_v2 = vpop.eup %899 }
 0x25f   :  { %v516_v3 = vsel %vm302_vm1, %v900_v2, 0.0 }
 0x260   :  { %517 = vadd.xlane.f32.xlu0 %v516_v3 }
 0x262   :  { %v902_v4 = vpop.eup %901 }
 0x263   :  { %v904_v5 = vpop.eup %903  ;;  %v519_v6 = vsel %vm302_vm1, %v902_v4, 0.0 }
 0x264   :  { %520 = vadd.xlane.f32.xlu1 %v519_v6  ;;  %v522_v7 = vsel %vm302_vm1, %v904_v5, 0.0 }
 0x265   :  { %523 = vadd.xlane.f32.xlu0 %v522_v7 }
 0x266   :  { %v906_v8 = vpop.eup %905 }
 0x267   :  { %v525_v9 = vsel %vm302_vm1, %v906_v8, 0.0 }
 0x268   :  { %526 = vadd.xlane.f32.xlu1 %v525_v9 }
 0x2ed   :  { %v518_v10 = vpop.xlane.xlu0 %517 }
 0x2ee   :  { %907 = vrcp.f32 %v518_v10 }
 0x2f1   :  { %v521_v11 = vpop.xlane.xlu1 %520 }
 0x2f2   :  { %v524_v12 = vpop.xlane.xlu0 %523  ;;  %909 = vrcp.f32 %v521_v11 }
 0x2f3   :  { %911 = vrcp.f32 %v524_v12 }
 0x2f5   :  { %v527_v13 = vpop.xlane.xlu1 %526 }
 0x2f6   :  { %913 = vrcp.f32 %v527_v13 }
 0x2f8   :  { %v908_v14 = vpop.eup %907 }
 0x2f9   :  { %v532_v15 = vmul.f32 %v908_v14, %v900_v2 }
 0x2fb   :  { %842 = vmatprep.mubr.msk.f32.mxu1 %vm302_vm1, %v532_v15 }
 0x2fc   :  { %v910_v16 = vpop.eup %909 }
 0x2fd   :  { %v912_v17 = vpop.eup %911  ;;  %v533_v18 = vmul.f32 %v910_v16, %v902_v4 }
 0x2fe   :  { %v534_v19 = vmul.f32 %v912_v17, %v904_v5 }
 0x2ff   :  { %843 = vmatmul.mubr.msk.f32.vlgmr.msra.gmra.mrb[6].mxu1 %vm302_vm1, %v533_v18 }
 0x300   :  { %v914_v20 = vpop.eup %913  ;;  %895 = vmatpush3.bf16.msra.mxu1 %v1033_v37  ;;  %849 = vmatprep.mubr.msk.f32.mxu1 %vm302_vm1, %v534_v19 }
 0x301   :  { %v535_v21 = vmul.f32 %v914_v20, %v906_v8 }
 0x303   :  { %850 = vmatmul.mubr.msk.f32.vlgmr.msra.gmra.mrb[8].mxu1 %vm302_vm1, %v535_v21 }
 0x3d2   :  { %v844_v22 = vpop.f32.mrb[6].mxu1 }
 0x3d3   :  { %699 = vst.msk [vmem:[#allocation2 + $0x8] sm:$0xff] %vm302_vm1, %v844_v22  ;;  %v608_v23 = vpop.f32.mrb[7].mxu1 }
 0x3d4   :  { %698 = vst.msk [vmem:[#allocation2] sm:$0xff] %vm302_vm1, %v608_v23 }
 0x3d6   :  { %v851_v24 = vpop.f32.mrb[8].mxu1 }
 0x3d7   :  { %701 = vst.msk [vmem:[#allocation2 + $0x18] sm:$0xff] %vm302_vm1, %v851_v24  ;;  %v689_v25 = vpop.f32.mrb[9].mxu1 }
 0x3d8   :  { %700 = vst.msk [vmem:[#allocation2 + $0x10] sm:$0xff] %vm302_vm1, %v689_v25 }
 0x3d9   :  { %926 = shalt.err (!%p923_p4)
}
 0x3da   :  { %s927_s22 = scalar_lea.hbm %s1069_s4, 512 }
 0x3db   :  { %p928_p5 = scmp.ne.s32.totalorder %s1069_s4, %s927_s22  ;;  %p931_p6 = scmp.lt.u32.totalorder %s927_s22, %s1069_s4 }
 0x3dd   :  { %p933_p7 = pnand %p931_p6, %p928_p5 }
 0x3df   :  { %936 = shalt.err (!%p933_p7)
}
 0x3e0   :  { %s940_s27 = smov 128   ;;  %s941_s28 = smov 8  }
 0x3e1   :  { %713 = dma.vmem_to_hbm [thread:$0]  %s708_s3, 512, %s1069_s4, [#allocation3], %s940_s27, %s940_s27, %s941_s28  }
 0x3e2   :  { %937 = dma.done.wait [#allocation3], 512  }
 0x3e3   :  { %938 = vsyncadd [#allocation3], 4294966784 }
 0x3e4   :  { %717 = vsyncpa [#allocation3], 1 }

</bundles_post_ra>
